<compile_context>
chip_gen: v7x
topology: tpu7x:2x2x1
jax: 0.10.0
libtpu: 0.0.40
codegen_flags: <defaults>
</compile_context>

<pallas_src>
import functools

import jax
import jax.numpy as jnp
from jax import lax
from jax.experimental import pallas as pl
from jax.experimental.pallas import tpu as pltpu


def _attention_pool_kernel(x_ref, w_ref, b_ref, c_ref, o_ref, *,
                           s_valid, low_precision, approx_recip):
    # x_ref: (TB, S, E)  w_ref: (E, E)  b_ref/c_ref: (1, E)  o_ref: (TB, E)
    TB, S, E = x_ref.shape

    x = x_ref[...]                            # native dtype (f32 or bf16)
    x2 = x.reshape(TB * S, E)                 # free merge (S padded to sublane pack)

    # h = tanh(x @ W + b): homogeneous-dtype MXU matmul, f32 accumulation,
    # f32 bias add + tanh (EUP).
    h = jnp.tanh(
        jnp.dot(x2, w_ref[...], preferred_element_type=jnp.float32)
        + b_ref[...]
    )                                         # (TB*S, E) f32
    if low_precision:
        h = h.astype(x.dtype)                 # shrink the largest intermediate

    # scores = h . c : VPU multiply + lane (E-axis) reduce; MXU stays free.
    h3 = h.reshape(TB, S, E)
    cvec = c_ref[...].astype(h.dtype)         # (1, E)
    scores = jnp.sum(h3 * cvec, axis=-1, dtype=jnp.float32)   # (TB, S)

    # Softmax over the sequence axis (S on the lane axis -> lane reductions).
    if s_valid < S:
        pos = lax.broadcasted_iota(jnp.int32, (TB, S), 1)
        mask = pos < s_valid                  # padded sequence positions -> 0 prob
    else:
        mask = None
    m = jnp.max(scores, axis=-1, keepdims=True)          # (TB, 1)
    e = jnp.exp(scores - m)                              # (TB, S)
    if mask is not None:
        e = jnp.where(mask, e, 0.0)
    denom = jnp.sum(e, axis=-1, keepdims=True)           # (TB, 1)
    p = e * pl.reciprocal(denom, approx=approx_recip)    # (TB, S)

    # Weighted sum over the sequence: out[b] = sum_s p[b, s] * x[b, s, :].
    if low_precision:
        prod = p.astype(x.dtype)[:, :, None] * x          # bf16 VPU multiply
        out = jnp.sum(prod, axis=1, dtype=jnp.float32)    # f32 accumulation
    else:
        out = jnp.sum(p[:, :, None] * x, axis=1)          # x already f32: no cast/copy
    o_ref[...] = out.astype(o_ref.dtype)


def attention_pool1d(x, W, b, c, *, block_b=None, approx_softmax_recip=True,
                     vmem_budget_bytes=None):
    """x: (B, S, E), W: (E, E), b: (E,), c: (E,) -> (B, E).

    approx_softmax_recip=True uses the EUP approximate reciprocal for the
    softmax denominator (~1e-3 relative error on the probabilities); pass
    False for an exact softmax.
    """
    B, S, E = x.shape
    out_dtype = x.dtype
    low_precision = (x.dtype == jnp.bfloat16)

    # Homogeneous MXU operands: W matches x.dtype.  b / c stay f32 (VPU math).
    W = W.astype(x.dtype)
    b = b.astype(jnp.float32)
    c = c.astype(jnp.float32)

    pack = 16 if low_precision else 8          # sublane pack of x / out dtype
    S_pad = pl.cdiv(S, pack) * pack            # free (TB,S,E)<->(TB*S,E) merges
    E_pad = pl.cdiv(E, 128) * 128              # lane-dense matmul / stores

    if S_pad != S or E_pad != E:
        x = jnp.pad(x, ((0, 0), (0, S_pad - S), (0, E_pad - E)))
    if E_pad != E:
        W = jnp.pad(W, ((0, E_pad - E), (0, E_pad - E)))
        b = jnp.pad(b, (0, E_pad - E))
        c = jnp.pad(c, (0, E_pad - E))
    b2 = b.reshape(1, E_pad)
    c2 = c.reshape(1, E_pad)

    # Per-generation VMEM budget: ~75% of physical VMEM (48 MiB on v7x,
    # 96 MiB on v5e/v6e) -- never the whole thing.
    if vmem_budget_bytes is None:
        try:
            cap = pltpu.get_tpu_info().vmem_capacity_bytes
        except Exception:
            cap = 64 * 1024 * 1024             # conservative if the query fails
        vmem_budget_bytes = min(96 * 1024 * 1024, int(cap) * 3 // 4)

    x_bytes = jnp.dtype(x.dtype).itemsize
    h_bytes = x_bytes if low_precision else 4

    def footprint(tb):
        # Double-buffered x/out tiles + single-buffered W/b/c + the (tb*S, E)
        # h intermediate.  Slack for vregs / compiler scratch comes from the
        # 75% budget above.
        x_tile = 2 * tb * S_pad * E_pad * x_bytes
        o_tile = 2 * tb * E_pad * x_bytes
        consts = E_pad * E_pad * x_bytes + 2 * E_pad * 4
        h_tmp = tb * S_pad * E_pad * h_bytes
        return x_tile + o_tile + consts + h_tmp

    if block_b is None:
        # Aim for ~1024 fused MXU rows per grid step, then bound by VMEM.
        tb = max(1, 1024 // max(S_pad, 1))
        if B >= 2 * pack:
            tb = min(tb, -(-B // 2))           # >=2 grid steps: keep both v7x TCs busy
        if tb < B:
            tb = max(pack, (tb // pack) * pack)
        tb = min(tb, B)
        while tb > pack and footprint(tb) > vmem_budget_bytes:
            tb = max(pack, ((tb // 2) // pack) * pack)
    else:
        tb = min(block_b, B)

    Bp = pl.cdiv(B, tb) * tb
    if Bp != B:
        # Padded (all-zero) batch rows pool to 0 and are sliced off below.
        x = jnp.pad(x, ((0, Bp - B), (0, 0), (0, 0)))

    kernel = functools.partial(
        _attention_pool_kernel,
        s_valid=S, low_precision=low_precision, approx_recip=approx_softmax_recip)

    def build(single_buffer_consts):
        def const_spec(shape):
            kwargs = ({"pipeline_mode": pl.Buffered(1)}
                      if single_buffer_consts else {})
            return pl.BlockSpec(shape, lambda i: tuple(0 for _ in shape), **kwargs)

        return pl.pallas_call(
            kernel,
            out_shape=jax.ShapeDtypeStruct((Bp, E_pad), out_dtype),
            grid_spec=pltpu.PrefetchScalarGridSpec(
                num_scalar_prefetch=0,
                grid=(Bp // tb,),
                in_specs=[
                    pl.BlockSpec((tb, S_pad, E_pad), lambda i: (i, 0, 0)),  # x tile
                    const_spec((E_pad, E_pad)),                             # W (resident)
                    const_spec((1, E_pad)),                                 # b
                    const_spec((1, E_pad)),                                 # c
                ],
                out_specs=pl.BlockSpec((tb, E_pad), lambda i: (i, 0)),
            ),
            compiler_params=pltpu.CompilerParams(
                dimension_semantics=("parallel",),
                vmem_limit_bytes=int(vmem_budget_bytes),
            ),
        )

    try:
        out = build(True)(x, W, b2, c2)
    except Exception:
        # Fallback if this Pallas build rejects pl.Buffered(1) on the
        # grid-constant operands (costs one extra VMEM copy of W, nothing else).
        out = build(False)(x, W, b2, c2)

    if Bp != B or E_pad != E:
        out = out[:B, :E]
    return out
    # TODO(synk): for very large E (f32 W >= ~2048 on v7x, >= ~4096 on
    # v5e/v6e) add a K-tiled grid axis over W with an f32 VMEM accumulator so
    # the resident weight fits the VMEM budget.


def attention_pool1d_ref(x, W, b, c):
    """Pure-JAX reference mirroring the PyTorch forward."""
    h = jnp.tanh(jnp.matmul(x, W) + b)             # (B, S, E)
    scores = jnp.matmul(h, c)                      # (B, S)
    probs = jax.nn.softmax(scores, axis=-1)        # (B, S)
    return jnp.sum(probs[..., None] * x, axis=1)   # (B, E)


def init_params(key, embed_size, std=0.02):
    # trunc_normal_-style init (truncation at +/- 2 std).
    kw, kb, kc = jax.random.split(key, 3)
    W = jax.random.truncated_normal(kw, -2.0, 2.0, (embed_size, embed_size),
                                    jnp.float32) * std
    b = jax.random.truncated_normal(kb, -2.0, 2.0, (embed_size,),
                                    jnp.float32) * std
    c = jax.random.truncated_normal(kc, -2.0, 2.0, (embed_size,),
                                    jnp.float32) * std
    return W, b, c


if __name__ == "__main__":
    key = jax.random.PRNGKey(0)

    def run_case(B, S, E, dtype, atol, rtol):
        kx, kp = jax.random.split(jax.random.fold_in(key, B * 1009 + S * 31 + E))
        x = jax.random.normal(kx, (B, S, E), jnp.float32).astype(dtype)
        W, b, c = init_params(kp, E)
        out = jax.block_until_ready(attention_pool1d(x, W, b, c))
        assert out.shape == (B, E) and out.dtype == dtype
        ref = attention_pool1d_ref(x.astype(jnp.float32), W, b, c)
        assert jnp.allclose(out.astype(jnp.float32), ref, atol=atol, rtol=rtol), \
            f"mismatch for B={B} S={S} E={E} {dtype}"

    # Small spec-like case (f32).
    run_case(2, 8, 32, jnp.float32, atol=2e-3, rtol=2e-3)
    # Exercises batch / sequence / embed padding, softmax masking and a
    # multi-step (megacore-shardable) grid.
    run_case(20, 7, 48, jnp.float32, atol=2e-3, rtol=2e-3)
    # bf16 path: bf16 MXU operands, bf16 h / weighted sum, f32 accumulation.
    run_case(4, 12, 64, jnp.bfloat16, atol=5e-2, rtol=5e-2)

    print("KERNEL_OK")
</pallas_src>

<mosaic_0001>
module attributes {stable_mosaic.version = 11 : i64} {
  func.func @_attention_pool_kernel(%arg0: i32, %arg1: memref<2x8x128xf32, #tpu.memory_space<vmem>>, %arg2: memref<128x128xf32, #tpu.memory_space<vmem>>, %arg3: memref<1x128xf32, #tpu.memory_space<vmem>>, %arg4: memref<1x128xf32, #tpu.memory_space<vmem>>, %arg5: memref<2x128xf32, #tpu.memory_space<vmem>>) attributes {dimension_semantics = [#tpu.dimension_semantics<parallel>], iteration_bounds = array<i64: 1>, scalar_prefetch = 0 : i64, scratch_operands = 0 : i64, tpu.core_type = #tpu.core_type<tc>, window_params = [{transform_indices = @transform_0, window_bounds = array<i64: 2, 8, 128>}, {pipeline_mode = #tpu.pipeline_mode<synchronous>, transform_indices = @transform_1, window_bounds = array<i64: 128, 128>}, {pipeline_mode = #tpu.pipeline_mode<synchronous>, transform_indices = @transform_2, window_bounds = array<i64: 1, 128>}, {pipeline_mode = #tpu.pipeline_mode<synchronous>, transform_indices = @transform_3, window_bounds = array<i64: 1, 128>}, {transform_indices = @transform_4, window_bounds = array<i64: 2, 128>}]} {
    %c0 = arith.constant 0 : index
    %c0_0 = arith.constant 0 : index
    %c0_1 = arith.constant 0 : index
    %0 = vector.load %arg1[%c0, %c0_0, %c0_1] : memref<2x8x128xf32, #tpu.memory_space<vmem>>, vector<2x8x128xf32>
    %1 = vector.shape_cast %0 : vector<2x8x128xf32> to vector<16x128xf32>
    %c0_2 = arith.constant 0 : index
    %c0_3 = arith.constant 0 : index
    %2 = vector.load %arg2[%c0_2, %c0_3] : memref<128x128xf32, #tpu.memory_space<vmem>>, vector<128x128xf32>
    %cst = arith.constant dense<0.000000e+00> : vector<16x128xf32>
    %3 = tpu.matmul %1, %2, %cst {dimension_numbers = #tpu.dot_dimension_numbers<[1], [0], [0], [1], [0, 0, 1, 1], [], []>} : vector<16x128xf32>, vector<128x128xf32>, vector<16x128xf32> -> vector<16x128xf32>
    %c0_4 = arith.constant 0 : index
    %c0_5 = arith.constant 0 : index
    %4 = vector.load %arg3[%c0_4, %c0_5] : memref<1x128xf32, #tpu.memory_space<vmem>>, vector<1x128xf32>
    %5 = vector.broadcast %4 : vector<1x128xf32> to vector<16x128xf32>
    %6 = arith.addf %3, %5 : vector<16x128xf32>
    %7 = math.tanh %6 : vector<16x128xf32>
    %8 = vector.shape_cast %7 : vector<16x128xf32> to vector<2x8x128xf32>
    %c0_6 = arith.constant 0 : index
    %c0_7 = arith.constant 0 : index
    %9 = vector.load %arg4[%c0_6, %c0_7] : memref<1x128xf32, #tpu.memory_space<vmem>>, vector<1x128xf32>
    %10 = vector.shape_cast %9 : vector<1x128xf32> to vector<1x1x128xf32>
    %11 = vector.broadcast %10 : vector<1x1x128xf32> to vector<2x8x128xf32>
    %12 = arith.mulf %8, %11 : vector<2x8x128xf32>
    %cst_8 = arith.constant dense<0.000000e+00> : vector<2x8xf32>
    %13 = vector.multi_reduction <add>, %12, %cst_8 [2] : vector<2x8x128xf32> to vector<2x8xf32>
    %cst_9 = arith.constant dense<0xFF800000> : vector<2xf32>
    %14 = vector.multi_reduction <maximumf>, %13, %cst_9 [1] : vector<2x8xf32> to vector<2xf32>
    %15 = vector.shape_cast %14 : vector<2xf32> to vector<2x1xf32>
    %16 = vector.broadcast %15 : vector<2x1xf32> to vector<2x8xf32>
    %17 = arith.subf %13, %16 : vector<2x8xf32>
    %18 = math.exp %17 : vector<2x8xf32>
    %cst_10 = arith.constant dense<0.000000e+00> : vector<2xf32>
    %19 = vector.multi_reduction <add>, %18, %cst_10 [1] : vector<2x8xf32> to vector<2xf32>
    %20 = vector.shape_cast %19 : vector<2xf32> to vector<2x1xf32>
    %21 = tpu.reciprocal %20 {approx = true} : vector<2x1xf32> -> vector<2x1xf32>
    %22 = vector.broadcast %21 : vector<2x1xf32> to vector<2x8xf32>
    %23 = arith.mulf %18, %22 : vector<2x8xf32>
    %24 = vector.shape_cast %23 : vector<2x8xf32> to vector<2x8x1xf32>
    %25 = vector.broadcast %24 : vector<2x8x1xf32> to vector<2x8x128xf32>
    %26 = arith.mulf %25, %0 : vector<2x8x128xf32>
    %cst_11 = arith.constant dense<0.000000e+00> : vector<2x128xf32>
    %27 = vector.multi_reduction <add>, %26, %cst_11 [1] : vector<2x8x128xf32> to vector<2x128xf32>
    %c0_12 = arith.constant 0 : index
    %c0_13 = arith.constant 0 : index
    %28 = vector.load %arg5[%c0_12, %c0_13] : memref<2x128xf32, #tpu.memory_space<vmem>>, vector<2x128xf32>
    tpu.vector_store %arg5[%c0_12, %c0_13], %27 {strides = array<i32>} : memref<2x128xf32, #tpu.memory_space<vmem>>, vector<2x128xf32>,
    return
  }
  func.func @transform_0(%arg0: i32) -> (i32, i32, i32) {
    %c0_i32 = arith.constant 0 : i32
    %c0_i32_0 = arith.constant 0 : i32
    %c0_i32_1 = arith.constant 0 : i32
    return %arg0, %c0_i32, %c0_i32_0 : i32, i32, i32
  }
  func.func @transform_1(%arg0: i32) -> (i32, i32) {
    %c0_i32 = arith.constant 0 : i32
    %c0_i32_0 = arith.constant 0 : i32
    %c0_i32_1 = arith.constant 0 : i32
    return %c0_i32, %c0_i32_0 : i32, i32
  }
  func.func @transform_2(%arg0: i32) -> (i32, i32) {
    %c0_i32 = arith.constant 0 : i32
    %c0_i32_0 = arith.constant 0 : i32
    %c0_i32_1 = arith.constant 0 : i32
    return %c0_i32, %c0_i32_0 : i32, i32
  }
  func.func @transform_3(%arg0: i32) -> (i32, i32) {
    %c0_i32 = arith.constant 0 : i32
    %c0_i32_0 = arith.constant 0 : i32
    %c0_i32_1 = arith.constant 0 : i32
    return %c0_i32, %c0_i32_0 : i32, i32
  }
  func.func @transform_4(%arg0: i32) -> (i32, i32) {
    %c0_i32 = arith.constant 0 : i32
    %c0_i32_0 = arith.constant 0 : i32
    return %arg0, %c0_i32 : i32, i32
  }
}

module attributes {stable_mosaic.version = 11 : i64} {
  func.func @_attention_pool_kernel(%arg0: i32, %arg1: memref<2x8x128xf32, #tpu.memory_space<vmem>>, %arg2: memref<128x128xf32, #tpu.memory_space<vmem>>, %arg3: memref<1x128xf32, #tpu.memory_space<vmem>>, %arg4: memref<1x128xf32, #tpu.memory_space<vmem>>, %arg5: memref<2x128xf32, #tpu.memory_space<vmem>>) attributes {dimension_semantics = [#tpu.dimension_semantics<parallel>], iteration_bounds = array<i64: 1>, scalar_prefetch = 0 : i64, scratch_operands = 0 : i64, tpu.core_type = #tpu.core_type<tc>, window_params = [{transform_indices = @transform_0, window_bounds = array<i64: 2, 8, 128>}, {pipeline_mode = #tpu.pipeline_mode<synchronous>, transform_indices = @transform_1, window_bounds = array<i64: 128, 128>}, {pipeline_mode = #tpu.pipeline_mode<synchronous>, transform_indices = @transform_2, window_bounds = array<i64: 1, 128>}, {pipeline_mode = #tpu.pipeline_mode<synchronous>, transform_indices = @transform_3, window_bounds = array<i64: 1, 128>}, {transform_indices = @transform_4, window_bounds = array<i64: 2, 128>}]} {
    %c0 = arith.constant 0 : index
    %c0_0 = arith.constant 0 : index
    %c0_1 = arith.constant 0 : index
    %0 = vector.load %arg1[%c0, %c0_0, %c0_1] : memref<2x8x128xf32, #tpu.memory_space<vmem>>, vector<2x8x128xf32>
    %1 = vector.shape_cast %0 : vector<2x8x128xf32> to vector<16x128xf32>
    %c0_2 = arith.constant 0 : index
    %c0_3 = arith.constant 0 : index
    %2 = vector.load %arg2[%c0_2, %c0_3] : memref<128x128xf32, #tpu.memory_space<vmem>>, vector<128x128xf32>
    %cst = arith.constant dense<0.000000e+00> : vector<16x128xf32>
    %3 = tpu.matmul %1, %2, %cst {dimension_numbers = #tpu.dot_dimension_numbers<[1], [0], [0], [1], [0, 0, 1, 1], [], []>} : vector<16x128xf32>, vector<128x128xf32>, vector<16x128xf32> -> vector<16x128xf32>
    %c0_4 = arith.constant 0 : index
    %c0_5 = arith.constant 0 : index
    %4 = vector.load %arg3[%c0_4, %c0_5] : memref<1x128xf32, #tpu.memory_space<vmem>>, vector<1x128xf32>
    %5 = vector.broadcast %4 : vector<1x128xf32> to vector<16x128xf32>
    %6 = arith.addf %3, %5 : vector<16x128xf32>
    %7 = math.tanh %6 : vector<16x128xf32>
    %8 = vector.shape_cast %7 : vector<16x128xf32> to vector<2x8x128xf32>
    %c0_6 = arith.constant 0 : index
    %c0_7 = arith.constant 0 : index
    %9 = vector.load %arg4[%c0_6, %c0_7] : memref<1x128xf32, #tpu.memory_space<vmem>>, vector<1x128xf32>
    %10 = vector.shape_cast %9 : vector<1x128xf32> to vector<1x1x128xf32>
    %11 = vector.broadcast %10 : vector<1x1x128xf32> to vector<2x8x128xf32>
    %12 = arith.mulf %8, %11 : vector<2x8x128xf32>
    %cst_8 = arith.constant dense<0.000000e+00> : vector<2x8xf32>
    %13 = vector.multi_reduction <add>, %12, %cst_8 [2] : vector<2x8x128xf32> to vector<2x8xf32>
    %cst_9 = arith.constant dense<0xFF800000> : vector<2xf32>
    %14 = vector.multi_reduction <maximumf>, %13, %cst_9 [1] : vector<2x8xf32> to vector<2xf32>
    %15 = vector.shape_cast %14 : vector<2xf32> to vector<2x1xf32>
    %16 = vector.broadcast %15 : vector<2x1xf32> to vector<2x8xf32>
    %17 = arith.subf %13, %16 : vector<2x8xf32>
    %18 = math.exp %17 : vector<2x8xf32>
    %cst_10 = arith.constant dense<0.000000e+00> : vector<2xf32>
    %19 = vector.multi_reduction <add>, %18, %cst_10 [1] : vector<2x8xf32> to vector<2xf32>
    %20 = vector.shape_cast %19 : vector<2xf32> to vector<2x1xf32>
    %21 = tpu.reciprocal %20 {approx = true} : vector<2x1xf32> -> vector<2x1xf32>
    %22 = vector.broadcast %21 : vector<2x1xf32> to vector<2x8xf32>
    %23 = arith.mulf %18, %22 : vector<2x8xf32>
    %24 = vector.shape_cast %23 : vector<2x8xf32> to vector<2x8x1xf32>
    %25 = vector.broadcast %24 : vector<2x8x1xf32> to vector<2x8x128xf32>
    %26 = arith.mulf %25, %0 : vector<2x8x128xf32>
    %cst_11 = arith.constant dense<0.000000e+00> : vector<2x128xf32>
    %27 = vector.multi_reduction <add>, %26, %cst_11 [1] : vector<2x8x128xf32> to vector<2x128xf32>
    %c0_12 = arith.constant 0 : index
    %c0_13 = arith.constant 0 : index
    %28 = vector.load %arg5[%c0_12, %c0_13] : memref<2x128xf32, #tpu.memory_space<vmem>>, vector<2x128xf32>
    tpu.vector_store %arg5[%c0_12, %c0_13], %27 {strides = array<i32>} : memref<2x128xf32, #tpu.memory_space<vmem>>, vector<2x128xf32>,
    return
  }
  func.func @transform_0(%arg0: i32) -> (i32, i32, i32) {
    %c0_i32 = arith.constant 0 : i32
    %c0_i32_0 = arith.constant 0 : i32
    %c0_i32_1 = arith.constant 0 : i32
    return %arg0, %c0_i32, %c0_i32_0 : i32, i32, i32
  }
  func.func @transform_1(%arg0: i32) -> (i32, i32) {
    %c0_i32 = arith.constant 0 : i32
    %c0_i32_0 = arith.constant 0 : i32
    %c0_i32_1 = arith.constant 0 : i32
    return %c0_i32, %c0_i32_0 : i32, i32
  }
  func.func @transform_2(%arg0: i32) -> (i32, i32) {
    %c0_i32 = arith.constant 0 : i32
    %c0_i32_0 = arith.constant 0 : i32
    %c0_i32_1 = arith.constant 0 : i32
    return %c0_i32, %c0_i32_0 : i32, i32
  }
  func.func @transform_3(%arg0: i32) -> (i32, i32) {
    %c0_i32 = arith.constant 0 : i32
    %c0_i32_0 = arith.constant 0 : i32
    %c0_i32_1 = arith.constant 0 : i32
    return %c0_i32, %c0_i32_0 : i32, i32
  }
  func.func @transform_4(%arg0: i32) -> (i32, i32) {
    %c0_i32 = arith.constant 0 : i32
    %c0_i32_0 = arith.constant 0 : i32
    return %arg0, %c0_i32 : i32, i32
  }
}

</mosaic_0001>

<bundles_post_ra>
// kernel: tpu_custom_call.1
= control target key start
LH: loop header
LB: loop body
LE: loop exit
PB: predicated region body
PF: predicated region fallthrough
CT: control target
= control target key end

     0   :  { %9 = vsyncpa [#allocation3], 0  ;;  %s540_s0 = inlined_call_operand.hbm [shape: f32[2,8,128], index: 0, kind: input, shape index: {}]   ;;  %s541_s1 = inlined_call_operand.hbm [shape: f32[128,128], index: 1, kind: input, shape index: {}]   ;;  %s542_s2 = inlined_call_operand.vmem [shape: f32[1,128], index: 2, kind: input, shape index: {}]   ;;  %s543_s3 = inlined_call_operand.vmem [shape: f32[1,128], index: 3, kind: input, shape index: {}]   ;;  %s544_s4 = inlined_call_operand.hbm [shape: f32[2,128], index: 4, kind: output, shape index: {}]  }
   0x1   :  { %10 = vsyncpa [#allocation6], 0 }
   0x2   :  { %11 = vsyncpa [#allocation4], 0  ;;  %s454_s15 = smov [#allocation2]   ;;  %s382_s19 = scalar_lea.hbm %s540_s0, 256 }
   0x3   :  { %s17_s16 = sshll.u32 %s454_s15, 4  ;;  %p383_p0 = scmp.ne.s32.totalorder %s540_s0, %s382_s19  ;;  %s18_s16 = int_to_ptr.vmem [resolvable:$true] %s17_s16 }
   0x4   :  { %p386_p1 = scmp.lt.u32.totalorder %s382_s19, %s540_s0 }
   0x6   :  { %p388_p2 = pnand %p386_p1, %p383_p0 }
   0x8   :  { %391 = shalt.err (!%p388_p2)
}
   0x9   :  { %s392_s24 = scalar_lea.vmem %s18_s16, 256  ;;  %p397_p4 = scmp.lt.s32.totalorder %s18_s16, %s18_s16 }
   0xa   :  { %p393_p3 = scmp.ne.s32.totalorder %s18_s16, %s392_s24  ;;  %p398_p5 = scmp.lt.s32.totalorder %s392_s24, %s392_s24 }
   0xc   :  { %p399_p6 = por %p398_p5, %p397_p4 }
   0xe   :  { %p400_p7 = pnand %p399_p6, %p393_p3 }
  0x10   :  { %403 = shalt.err (!%p400_p7)
}
  0x11   :  { %s455_s25 = smov 128   ;;  %s456_s26 = smov 8  }
  0x12   :  { %23 = dma.hbm_to_vmem [thread:$0]  %s540_s0, 256, %s18_s16, [#allocation3], %s455_s25, %s455_s25, %s456_s26  }
  0x13   :  { %s457_s29 = smov [#allocation5]   ;;  %s404_s7 = scalar_lea.hbm %s541_s1, 2048 }
  0x14   :  { %s29_s30 = sshll.u32 %s457_s29, 4  ;;  %p405_p8 = scmp.ne.s32.totalorder %s541_s1, %s404_s7  ;;  %s30_s30 = int_to_ptr.vmem [resolvable:$true] %s29_s30 }
  0x15   :  { %p408_p9 = scmp.lt.u32.totalorder %s404_s7, %s541_s1 }
  0x17   :  { %p410_p10 = pnand %p408_p9, %p405_p8 }
  0x19   :  { %413 = shalt.err (!%p410_p10)
}
  0x1a   :  { %s414_s12 = scalar_lea.vmem %s30_s30, 2048  ;;  %p419_p12 = scmp.lt.s32.totalorder %s30_s30, %s30_s30 }
  0x1b   :  { %p415_p11 = scmp.ne.s32.totalorder %s30_s30, %s414_s12  ;;  %p420_p13 = scmp.lt.s32.totalorder %s414_s12, %s414_s12 }
  0x1d   :  { %p421_p0 = por %p420_p13, %p419_p12 }
  0x1f   :  { %p422_p1 = pnand %p421_p0, %p415_p11 }
  0x21   :  { %425 = shalt.err (!%p422_p1)
}
  0x22   :  { %35 = dma.hbm_to_vmem [thread:$0]  %s541_s1, 2048, %s30_s30, [#allocation6], %s455_s25, %s455_s25, %s456_s26  }
  0x23   :  { %448 = dma.done.wait [#allocation3], 256  }
  0x24   :  { %449 = vsyncadd [#allocation3], 4294967040 }
  0x25   :  { %450 = dma.done.wait [#allocation6], 2048  }
  0x26   :  { %451 = vsyncadd [#allocation6], 4294965248  ;;  %v48_v0 = vld [vmem:[#allocation5] sm:$0xff]  ;;  %v49_v1 = vld [vmem:[#allocation5 + $0x8] sm:$0xff]  ;;  %v163_v36 = vlaneseq  ;;  %vm173_vm0 = vcmask 1041409   ;;  %vm176_vm1 = vcmask 58368  }
  0x27   :  { %v50_v2 = vld [vmem:[#allocation5 + $0x10] sm:$0xff]  ;;  %v332_v3 = vpack.c.bf16 %v49_v1, %v48_v0  ;;  %v51_v4 = vld [vmem:[#allocation5 + $0x18] sm:$0xff]  ;;  %v52_v6 = vld [vmem:[#allocation5 + $0x20] sm:$0xff]  ;;  %v458_v46 = vmov 0  }
  0x28   :  { %v336_v5 = vpack.c.bf16 %v51_v4, %v50_v2  ;;  %v53_v7 = vld [vmem:[#allocation5 + $0x28] sm:$0xff]  ;;  %v509_v9 = vld [vmem:[#allocation2] sm:$0xff]  ;;  %v55_v11 = vld [vmem:[#allocation5 + $0x38] sm:$0xff]  ;;  %v164_v37 = vand.u32 127, %v163_v36  ;;  %v166_v38 = vshrl.u32 %v163_v36, 7  ;;  %371 = vset.pattern.permute.xlu0 %v458_v46  ;;  %370 = vset.pattern.permute.xlu1 %v458_v46 }
  0x29   :  { %333 = vmatprep.subr.bf16.mxu0 %v332_v3  ;;  %v340_v8 = vpack.c.bf16 %v53_v7, %v52_v6  ;;  %v54_v10 = vld [vmem:[#allocation5 + $0x30] sm:$0xff]  ;;  %329 = vmatprep.mubr.f32.mxu0 %v509_v9  ;;  %v56_v13 = vld [vmem:[#allocation5 + $0x40] sm:$0xff]  ;;  %v57_v14 = vld [vmem:[#allocation5 + $0x48] sm:$0xff] }
  0x2a   :  { %335 = vmatpush3.bf16.msra.mxu0 %v332_v3  ;;  %v344_v12 = vpack.c.bf16 %v55_v11, %v54_v10  ;;  %v348_v15 = vpack.c.bf16 %v57_v14, %v56_v13  ;;  %v58_v16 = vld [vmem:[#allocation5 + $0x50] sm:$0xff]  ;;  %v59_v17 = vld [vmem:[#allocation5 + $0x58] sm:$0xff]  ;;  %v60_v19 = vld [vmem:[#allocation5 + $0x60] sm:$0xff]  ;;  %v167_v40 = vsub.s32 %v164_v37, %v166_v38  ;;  %v183_v47 = vsub.s32 0, %v166_v38 }
  0x2b   :  { %337 = vmatprep.subr.bf16.mxu0 %v336_v5  ;;  %v352_v18 = vpack.c.bf16 %v59_v17, %v58_v16  ;;  %v61_v20 = vld [vmem:[#allocation5 + $0x68] sm:$0xff]  ;;  %v62_v22 = vld [vmem:[#allocation5 + $0x70] sm:$0xff]  ;;  %v63_v23 = vld [vmem:[#allocation5 + $0x78] sm:$0xff]  ;;  %v187_v48 = vsub.s32 1, %v166_v38 }
  0x2c   :  { %v356_v21 = vpack.c.bf16 %v61_v20, %v60_v19  ;;  %v360_v24 = vpack.c.bf16 %v63_v23, %v62_v22  ;;  %v512_v25 = vld [vmem:[#allocation2 + $0x8] sm:$0xff]  ;;  %v277_v26 = vld [vmem:[%s542_s2] ss:$0 sm:$0xff]  ;;  %s459_s2 = smov [#allocation7]  }
  0x2d   :  { %v278_v31 = vld [vmem:[%s543_s3] ss:$0 sm:$0xff]  ;;  %s267_s3 = sshll.u32 %s459_s2, 4  ;;  %s268_s3 = int_to_ptr.vmem [resolvable:$true] %s267_s3 }
  0x2e   :  { %339 = vmatpush3.bf16.msra.mxu0 %v336_v5  ;;  %s426_s17 = scalar_lea.vmem %s268_s3, 32  ;;  %p431_p3 = scmp.lt.s32.totalorder %s268_s3, %s268_s3 }
  0x2f   :  { %341 = vmatprep.subr.bf16.mxu0 %v340_v8  ;;  %p427_p2 = scmp.ne.s32.totalorder %s268_s3, %s426_s17  ;;  %p432_p4 = scmp.lt.s32.totalorder %s426_s17, %s426_s17 }
  0x31   :  { %p433_p5 = por %p432_p4, %p431_p3 }
  0x32   :  { %343 = vmatpush3.bf16.msra.mxu0 %v340_v8 }
  0x33   :  { %345 = vmatprep.subr.bf16.mxu0 %v344_v12  ;;  %p434_p6 = pnand %p433_p5, %p427_p2 }
  0x36   :  { %347 = vmatpush3.bf16.msra.mxu0 %v344_v12 }
  0x37   :  { %349 = vmatprep.subr.bf16.mxu0 %v348_v15 }
  0x3a   :  { %351 = vmatpush3.bf16.msra.mxu0 %v348_v15 }
  0x3b   :  { %353 = vmatprep.subr.bf16.mxu0 %v352_v18 }
  0x3e   :  { %355 = vmatpush3.bf16.msra.mxu0 %v352_v18 }
  0x3f   :  { %357 = vmatprep.subr.bf16.mxu0 %v356_v21 }
  0x42   :  { %359 = vmatpush3.bf16.msra.mxu0 %v356_v21 }
  0x43   :  { %361 = vmatprep.subr.bf16.mxu0 %v360_v24 }
  0x46   :  { %363 = vmatpush3.bf16.msra.mxu0 %v360_v24 }
  0x49   :  { %330 = vmatmul.mubr.f32.vlgmr.msra.gmra.mrb[0].mxu0 %v512_v25 }
 0x11c   :  { %v331_v27 = vpop.f32.mrb[0].mxu0 }
 0x11d   :  { %v137_v28 = vpop.f32.mrb[1].mxu0  ;;  %v143_v29 = vadd.f32 %v331_v27, %v277_v26 }
 0x11e   :  { %v138_v30 = vadd.f32 %v277_v26, %v137_v28 }
 0x120   :  { %372 = vtanh.f32 %v138_v30 }
 0x121   :  { %374 = vtanh.f32 %v143_v29 }
 0x12a   :  { %v373_v32 = vpop.eup %372 }
 0x12b   :  { %v155_v33 = vmul.f32 %v373_v32, %v278_v31  ;;  %v375_v34 = vpop.eup %374 }
 0x12c   :  { %v156_v35 = vmul.f32 %v375_v34, %v278_v31 }
 0x12d   :  { %157 = vadd.xlane.f32.xlu0 %v155_v33 }
 0x131   :  { %159 = vadd.xlane.f32.xlu0 %v156_v35 }
 0x1ba   :  { %v158_v39 = vpop.xlane.xlu0 %157 }
 0x1bb   :  { %v168_v42 = vrot.slane %v158_v39, %v167_v40 }
 0x1be   :  { %v160_v41 = vpop.xlane.xlu0 %159 }
 0x1bf   :  { %v172_v43 = vrot.slane %v160_v41, %v167_v40 }
 0x1c1   :  { %v174_v44 = vsel %vm173_vm0, %v172_v43, %v168_v42 }
 0x1c2   :  { %v177_v45 = vsel %vm176_vm1, %v174_v44, -inf }
 0x1c3   :  { %178 = vmax.xlane.f32.xlu1 %v177_v45 }
 0x250   :  { %v179_v49 = vpop.xlane.xlu1 %178 }
 0x251   :  { %v184_v50 = vrot.slane %v179_v49, %v183_v47  ;;  %v188_v51 = vrot.slane %v179_v49, %v187_v48 }
 0x253   :  { %v191_v52 = vsub.f32 %v158_v39, %v184_v50  ;;  %v192_v53 = vsub.f32 %v160_v41, %v188_v51 }
 0x255   :  { %v193_v54 = vmul.f32 1.442695, %v191_v52  ;;  %v195_v55 = vmul.f32 1.442695, %v192_v53 }
 0x257   :  { %376 = vpow2.f32 %v193_v54 }
 0x258   :  { %378 = vpow2.f32 %v195_v55 }
 0x261   :  { %v377_v56 = vpop.eup %376 }
 0x262   :  { %v379_v57 = vpop.eup %378  ;;  %200 = vperm.xlu1 %370, %v377_v56  }
 0x263   :  { %203 = vperm.xlu0 %371, %v379_v57  }
 0x2e1   :  { %v201_v58 = vpop.permute.xlu1 %200 }
 0x2e2   :  { %v204_v59 = vpop.permute.xlu0 %203  ;;  %v208_v60 = vrot.slane %v201_v58, %v167_v40 }
 0x2e3   :  { %v212_v61 = vrot.slane %v204_v59, %v167_v40 }
 0x2e5   :  { %v213_v62 = vsel %vm173_vm0, %v212_v61, %v208_v60 }
 0x2e6   :  { %v215_v63 = vsel %vm176_vm1, %v213_v62, 0.0 }
 0x2e7   :  { %216 = vadd.xlane.f32.xlu1 %v215_v63 }
 0x374   :  { %v217_v0 = vpop.xlane.xlu1 %216 }
 0x375   :  { %380 = vrcp.f32 %v217_v0 }
 0x37f   :  { %v381_v1 = vpop.eup %380 }
 0x380   :  { %v223_v2 = vrot.slane %v381_v1, %v183_v47  ;;  %v227_v4 = vrot.slane %v381_v1, %v187_v48 }
 0x382   :  { %v230_v3 = vmul.f32 %v377_v56, %v223_v2  ;;  %v231_v5 = vmul.f32 %v379_v57, %v227_v4 }
 0x384   :  { %234 = vperm.xlu0 %371, %v230_v3  }
 0x388   :  { %239 = vperm.xlu0 %371, %v231_v5  }
 0x403   :  { %v235_v6 = vpop.permute.xlu0 %234 }
 0x404   :  { %v242_v7 = vmul.f32 %v235_v6, %v509_v9 }
 0x406   :  { %v244_v8 = vrot.slane %v242_v7, 4 }
 0x407   :  { %v240_v10 = vpop.permute.xlu0 %239 }
 0x408   :  { %v245_v11 = vadd.f32 %v244_v8, %v242_v7  ;;  %v243_v12 = vmul.f32 %v240_v10, %v512_v25 }
 0x40a   :  { %v246_v13 = vrot.slane %v245_v11, 2  ;;  %v250_v14 = vrot.slane %v243_v12, 4 }
 0x40c   :  { %v247_v15 = vadd.f32 %v246_v13, %v245_v11  ;;  %v251_v16 = vadd.f32 %v250_v14, %v243_v12 }
 0x40e   :  { %v252_v17 = vrot.slane %v251_v16, 2  ;;  %v248_v18 = vrot.slane %v247_v15, 1 }
 0x410   :  { %v253_v19 = vadd.f32 %v252_v17, %v251_v16  ;;  %v249_v21 = vadd.f32 %v248_v18, %v247_v15 }
 0x412   :  { %v254_v20 = vrot.slane %v253_v19, 1 }
 0x414   :  { %v255_v22 = vadd.f32 %v254_v20, %v253_v19 }
 0x416   :  { %v258_v9 = vsel %vm173_vm0, %v255_v22, %v249_v21 }
 0x417   :  { %260 = vst [vmem:[#allocation7] sm:$0x3] %v258_v9 }
 0x418   :  { %437 = shalt.err (!%p434_p6)
}
 0x419   :  { %s438_s20 = scalar_lea.hbm %s544_s4, 32 }
 0x41a   :  { %p439_p7 = scmp.ne.s32.totalorder %s544_s4, %s438_s20  ;;  %p442_p8 = scmp.lt.u32.totalorder %s438_s20, %s544_s4 }
 0x41c   :  { %p444_p9 = pnand %p442_p8, %p439_p7 }
 0x41e   :  { %447 = shalt.err (!%p444_p9)
}
 0x41f   :  { %270 = dma.vmem_to_hbm [thread:$0]  %s268_s3, 32, %s544_s4, [#allocation4]  }
 0x420   :  { %452 = dma.done.wait [#allocation4], 32  }
 0x421   :  { %453 = vsyncadd [#allocation4], 4294967264 }
 0x422   :  { %274 = vsyncpa [#allocation3], 1 }
 0x423   :  { %275 = vsyncpa [#allocation6], 1 }
 0x424   :  { %276 = vsyncpa [#allocation4], 1 }

// kernel: tpu_custom_call.1
= control target key start
LH: loop header
LB: loop body
LE: loop exit
PB: predicated region body
PF: predicated region fallthrough
CT: control target
= control target key end

     0   :  { %9 = vsyncpa [#allocation3], 0  ;;  %s540_s0 = inlined_call_operand.hbm [shape: f32[2,8,128], index: 0, kind: input, shape index: {}]   ;;  %s541_s1 = inlined_call_operand.hbm [shape: f32[128,128], index: 1, kind: input, shape index: {}]   ;;  %s542_s2 = inlined_call_operand.vmem [shape: f32[1,128], index: 2, kind: input, shape index: {}]   ;;  %s543_s3 = inlined_call_operand.vmem [shape: f32[1,128], index: 3, kind: input, shape index: {}]   ;;  %s544_s4 = inlined_call_operand.hbm [shape: f32[2,128], index: 4, kind: output, shape index: {}]  }
   0x1   :  { %10 = vsyncpa [#allocation6], 0 }
   0x2   :  { %11 = vsyncpa [#allocation4], 0  ;;  %s454_s15 = smov [#allocation2]   ;;  %s382_s19 = scalar_lea.hbm %s540_s0, 256 }
   0x3   :  { %s17_s16 = sshll.u32 %s454_s15, 4  ;;  %p383_p0 = scmp.ne.s32.totalorder %s540_s0, %s382_s19  ;;  %s18_s16 = int_to_ptr.vmem [resolvable:$true] %s17_s16 }
   0x4   :  { %p386_p1 = scmp.lt.u32.totalorder %s382_s19, %s540_s0 }
   0x6   :  { %p388_p2 = pnand %p386_p1, %p383_p0 }
   0x8   :  { %391 = shalt.err (!%p388_p2)
}
   0x9   :  { %s392_s24 = scalar_lea.vmem %s18_s16, 256  ;;  %p397_p4 = scmp.lt.s32.totalorder %s18_s16, %s18_s16 }
   0xa   :  { %p393_p3 = scmp.ne.s32.totalorder %s18_s16, %s392_s24  ;;  %p398_p5 = scmp.lt.s32.totalorder %s392_s24, %s392_s24 }
   0xc   :  { %p399_p6 = por %p398_p5, %p397_p4 }
   0xe   :  { %p400_p7 = pnand %p399_p6, %p393_p3 }
  0x10   :  { %403 = shalt.err (!%p400_p7)
}
  0x11   :  { %s455_s25 = smov 128   ;;  %s456_s26 = smov 8  }
  0x12   :  { %23 = dma.hbm_to_vmem [thread:$0]  %s540_s0, 256, %s18_s16, [#allocation3], %s455_s25, %s455_s25, %s456_s26  }
  0x13   :  { %s457_s29 = smov [#allocation5]   ;;  %s404_s7 = scalar_lea.hbm %s541_s1, 2048 }
  0x14   :  { %s29_s30 = sshll.u32 %s457_s29, 4  ;;  %p405_p8 = scmp.ne.s32.totalorder %s541_s1, %s404_s7  ;;  %s30_s30 = int_to_ptr.vmem [resolvable:$true] %s29_s30 }
  0x15   :  { %p408_p9 = scmp.lt.u32.totalorder %s404_s7, %s541_s1 }
  0x17   :  { %p410_p10 = pnand %p408_p9, %p405_p8 }
  0x19   :  { %413 = shalt.err (!%p410_p10)
}
  0x1a   :  { %s414_s12 = scalar_lea.vmem %s30_s30, 2048  ;;  %p419_p12 = scmp.lt.s32.totalorder %s30_s30, %s30_s30 }
  0x1b   :  { %p415_p11 = scmp.ne.s32.totalorder %s30_s30, %s414_s12  ;;  %p420_p13 = scmp.lt.s32.totalorder %s414_s12, %s414_s12 }
  0x1d   :  { %p421_p0 = por %p420_p13, %p419_p12 }
  0x1f   :  { %p422_p1 = pnand %p421_p0, %p415_p11 }
  0x21   :  { %425 = shalt.err (!%p422_p1)
}
  0x22   :  { %35 = dma.hbm_to_vmem [thread:$0]  %s541_s1, 2048, %s30_s30, [#allocation6], %s455_s25, %s455_s25, %s456_s26  }
  0x23   :  { %448 = dma.done.wait [#allocation3], 256  }
  0x24   :  { %449 = vsyncadd [#allocation3], 4294967040 }
  0x25   :  { %450 = dma.done.wait [#allocation6], 2048  }
  0x26   :  { %451 = vsyncadd [#allocation6], 4294965248  ;;  %v48_v0 = vld [vmem:[#allocation5] sm:$0xff]  ;;  %v49_v1 = vld [vmem:[#allocation5 + $0x8] sm:$0xff]  ;;  %v163_v36 = vlaneseq  ;;  %vm173_vm0 = vcmask 1041409   ;;  %vm176_vm1 = vcmask 58368  }
  0x27   :  { %v50_v2 = vld [vmem:[#allocation5 + $0x10] sm:$0xff]  ;;  %v332_v3 = vpack.c.bf16 %v49_v1, %v48_v0  ;;  %v51_v4 = vld [vmem:[#allocation5 + $0x18] sm:$0xff]  ;;  %v52_v6 = vld [vmem:[#allocation5 + $0x20] sm:$0xff]  ;;  %v458_v46 = vmov 0  }
  0x28   :  { %v336_v5 = vpack.c.bf16 %v51_v4, %v50_v2  ;;  %v53_v7 = vld [vmem:[#allocation5 + $0x28] sm:$0xff]  ;;  %v509_v9 = vld [vmem:[#allocation2] sm:$0xff]  ;;  %v55_v11 = vld [vmem:[#allocation5 + $0x38] sm:$0xff]  ;;  %v164_v37 = vand.u32 127, %v163_v36  ;;  %v166_v38 = vshrl.u32 %v163_v36, 7  ;;  %371 = vset.pattern.permute.xlu0 %v458_v46  ;;  %370 = vset.pattern.permute.xlu1 %v458_v46 }
  0x29   :  { %333 = vmatprep.subr.bf16.mxu0 %v332_v3  ;;  %v340_v8 = vpack.c.bf16 %v53_v7, %v52_v6  ;;  %v54_v10 = vld [vmem:[#allocation5 + $0x30] sm:$0xff]  ;;  %329 = vmatprep.mubr.f32.mxu0 %v509_v9  ;;  %v56_v13 = vld [vmem:[#allocation5 + $0x40] sm:$0xff]  ;;  %v57_v14 = vld [vmem:[#allocation5 + $0x48] sm:$0xff] }
  0x2a   :  { %335 = vmatpush3.bf16.msra.mxu0 %v332_v3  ;;  %v344_v12 = vpack.c.bf16 %v55_v11, %v54_v10  ;;  %v348_v15 = vpack.c.bf16 %v57_v14, %v56_v13  ;;  %v58_v16 = vld [vmem:[#allocation5 + $0x50] sm:$0xff]  ;;  %v59_v17 = vld [vmem:[#allocation5 + $0x58] sm:$0xff]  ;;  %v60_v19 = vld [vmem:[#allocation5 + $0x60] sm:$0xff]  ;;  %v167_v40 = vsub.s32 %v164_v37, %v166_v38  ;;  %v183_v47 = vsub.s32 0, %v166_v38 }
  0x2b   :  { %337 = vmatprep.subr.bf16.mxu0 %v336_v5  ;;  %v352_v18 = vpack.c.bf16 %v59_v17, %v58_v16  ;;  %v61_v20 = vld [vmem:[#allocation5 + $0x68] sm:$0xff]  ;;  %v62_v22 = vld [vmem:[#allocation5 + $0x70] sm:$0xff]  ;;  %v63_v23 = vld [vmem:[#allocation5 + $0x78] sm:$0xff]  ;;  %v187_v48 = vsub.s32 1, %v166_v38 }
  0x2c   :  { %v356_v21 = vpack.c.bf16 %v61_v20, %v60_v19  ;;  %v360_v24 = vpack.c.bf16 %v63_v23, %v62_v22  ;;  %v512_v25 = vld [vmem:[#allocation2 + $0x8] sm:$0xff]  ;;  %v277_v26 = vld [vmem:[%s542_s2] ss:$0 sm:$0xff]  ;;  %s459_s2 = smov [#allocation7]  }
  0x2d   :  { %v278_v31 = vld [vmem:[%s543_s3] ss:$0 sm:$0xff]  ;;  %s267_s3 = sshll.u32 %s459_s2, 4  ;;  %s268_s3 = int_to_ptr.vmem [resolvable:$true] %s267_s3 }
  0x2e   :  { %339 = vmatpush3.bf16.msra.mxu0 %v336_v5  ;;  %s426_s17 = scalar_lea.vmem %s268_s3, 32  ;;  %p431_p3 = scmp.lt.s32.totalorder %s268_s3, %s268_s3 }
  0x2f   :  { %341 = vmatprep.subr.bf16.mxu0 %v340_v8  ;;  %p427_p2 = scmp.ne.s32.totalorder %s268_s3, %s426_s17  ;;  %p432_p4 = scmp.lt.s32.totalorder %s426_s17, %s426_s17 }
  0x31   :  { %p433_p5 = por %p432_p4, %p431_p3 }
  0x32   :  { %343 = vmatpush3.bf16.msra.mxu0 %v340_v8 }
  0x33   :  { %345 = vmatprep.subr.bf16.mxu0 %v344_v12  ;;  %p434_p6 = pnand %p433_p5, %p427_p2 }
  0x36   :  { %347 = vmatpush3.bf16.msra.mxu0 %v344_v12 }
  0x37   :  { %349 = vmatprep.subr.bf16.mxu0 %v348_v15 }
  0x3a   :  { %351 = vmatpush3.bf16.msra.mxu0 %v348_v15 }
  0x3b   :  { %353 = vmatprep.subr.bf16.mxu0 %v352_v18 }
  0x3e   :  { %355 = vmatpush3.bf16.msra.mxu0 %v352_v18 }
  0x3f   :  { %357 = vmatprep.subr.bf16.mxu0 %v356_v21 }
  0x42   :  { %359 = vmatpush3.bf16.msra.mxu0 %v356_v21 }
  0x43   :  { %361 = vmatprep.subr.bf16.mxu0 %v360_v24 }
  0x46   :  { %363 = vmatpush3.bf16.msra.mxu0 %v360_v24 }
  0x49   :  { %330 = vmatmul.mubr.f32.vlgmr.msra.gmra.mrb[0].mxu0 %v512_v25 }
 0x11c   :  { %v331_v27 = vpop.f32.mrb[0].mxu0 }
 0x11d   :  { %v137_v28 = vpop.f32.mrb[1].mxu0  ;;  %v143_v29 = vadd.f32 %v331_v27, %v277_v26 }
 0x11e   :  { %v138_v30 = vadd.f32 %v277_v26, %v137_v28 }
 0x120   :  { %372 = vtanh.f32 %v138_v30 }
 0x121   :  { %374 = vtanh.f32 %v143_v29 }
 0x12a   :  { %v373_v32 = vpop.eup %372 }
 0x12b   :  { %v155_v33 = vmul.f32 %v373_v32, %v278_v31  ;;  %v375_v34 = vpop.eup %374 }
 0x12c   :  { %v156_v35 = vmul.f32 %v375_v34, %v278_v31 }
 0x12d   :  { %157 = vadd.xlane.f32.xlu0 %v155_v33 }
 0x131   :  { %159 = vadd.xlane.f32.xlu0 %v156_v35 }
 0x1ba   :  { %v158_v39 = vpop.xlane.xlu0 %157 }
 0x1bb   :  { %v168_v42 = vrot.slane %v158_v39, %v167_v40 }
 0x1be   :  { %v160_v41 = vpop.xlane.xlu0 %159 }
 0x1bf   :  { %v172_v43 = vrot.slane %v160_v41, %v167_v40 }
 0x1c1   :  { %v174_v44 = vsel %vm173_vm0, %v172_v43, %v168_v42 }
 0x1c2   :  { %v177_v45 = vsel %vm176_vm1, %v174_v44, -inf }
 0x1c3   :  { %178 = vmax.xlane.f32.xlu1 %v177_v45 }
 0x250   :  { %v179_v49 = vpop.xlane.xlu1 %178 }
 0x251   :  { %v184_v50 = vrot.slane %v179_v49, %v183_v47  ;;  %v188_v51 = vrot.slane %v179_v49, %v187_v48 }
 0x253   :  { %v191_v52 = vsub.f32 %v158_v39, %v184_v50  ;;  %v192_v53 = vsub.f32 %v160_v41, %v188_v51 }
 0x255   :  { %v193_v54 = vmul.f32 1.442695, %v191_v52  ;;  %v195_v55 = vmul.f32 1.442695, %v192_v53 }
 0x257   :  { %376 = vpow2.f32 %v193_v54 }
 0x258   :  { %378 = vpow2.f32 %v195_v55 }
 0x261   :  { %v377_v56 = vpop.eup %376 }
 0x262   :  { %v379_v57 = vpop.eup %378  ;;  %200 = vperm.xlu1 %370, %v377_v56  }
 0x263   :  { %203 = vperm.xlu0 %371, %v379_v57  }
 0x2e1   :  { %v201_v58 = vpop.permute.xlu1 %200 }
 0x2e2   :  { %v204_v59 = vpop.permute.xlu0 %203  ;;  %v208_v60 = vrot.slane %v201_v58, %v167_v40 }
 0x2e3   :  { %v212_v61 = vrot.slane %v204_v59, %v167_v40 }
 0x2e5   :  { %v213_v62 = vsel %vm173_vm0, %v212_v61, %v208_v60 }
 0x2e6   :  { %v215_v63 = vsel %vm176_vm1, %v213_v62, 0.0 }
 0x2e7   :  { %216 = vadd.xlane.f32.xlu1 %v215_v63 }
 0x374   :  { %v217_v0 = vpop.xlane.xlu1 %216 }
 0x375   :  { %380 = vrcp.f32 %v217_v0 }
 0x37f   :  { %v381_v1 = vpop.eup %380 }
 0x380   :  { %v223_v2 = vrot.slane %v381_v1, %v183_v47  ;;  %v227_v4 = vrot.slane %v381_v1, %v187_v48 }
 0x382   :  { %v230_v3 = vmul.f32 %v377_v56, %v223_v2  ;;  %v231_v5 = vmul.f32 %v379_v57, %v227_v4 }
 0x384   :  { %234 = vperm.xlu0 %371, %v230_v3  }
 0x388   :  { %239 = vperm.xlu0 %371, %v231_v5  }
 0x403   :  { %v235_v6 = vpop.permute.xlu0 %234 }
 0x404   :  { %v242_v7 = vmul.f32 %v235_v6, %v509_v9 }
 0x406   :  { %v244_v8 = vrot.slane %v242_v7, 4 }
 0x407   :  { %v240_v10 = vpop.permute.xlu0 %239 }
 0x408   :  { %v245_v11 = vadd.f32 %v244_v8, %v242_v7  ;;  %v243_v12 = vmul.f32 %v240_v10, %v512_v25 }
 0x40a   :  { %v246_v13 = vrot.slane %v245_v11, 2  ;;  %v250_v14 = vrot.slane %v243_v12, 4 }
 0x40c   :  { %v247_v15 = vadd.f32 %v246_v13, %v245_v11  ;;  %v251_v16 = vadd.f32 %v250_v14, %v243_v12 }
 0x40e   :  { %v252_v17 = vrot.slane %v251_v16, 2  ;;  %v248_v18 = vrot.slane %v247_v15, 1 }
 0x410   :  { %v253_v19 = vadd.f32 %v252_v17, %v251_v16  ;;  %v249_v21 = vadd.f32 %v248_v18, %v247_v15 }
 0x412   :  { %v254_v20 = vrot.slane %v253_v19, 1 }
 0x414   :  { %v255_v22 = vadd.f32 %v254_v20, %v253_v19 }
 0x416   :  { %v258_v9 = vsel %vm173_vm0, %v255_v22, %v249_v21 }
 0x417   :  { %260 = vst [vmem:[#allocation7] sm:$0x3] %v258_v9 }
 0x418   :  { %437 = shalt.err (!%p434_p6)
}
 0x419   :  { %s438_s20 = scalar_lea.hbm %s544_s4, 32 }
 0x41a   :  { %p439_p7 = scmp.ne.s32.totalorder %s544_s4, %s438_s20  ;;  %p442_p8 = scmp.lt.u32.totalorder %s438_s20, %s544_s4 }
 0x41c   :  { %p444_p9 = pnand %p442_p8, %p439_p7 }
 0x41e   :  { %447 = shalt.err (!%p444_p9)
}
 0x41f   :  { %270 = dma.vmem_to_hbm [thread:$0]  %s268_s3, 32, %s544_s4, [#allocation4]  }
 0x420   :  { %452 = dma.done.wait [#allocation4], 32  }
 0x421   :  { %453 = vsyncadd [#allocation4], 4294967264 }
 0x422   :  { %274 = vsyncpa [#allocation3], 1 }
 0x423   :  { %275 = vsyncpa [#allocation6], 1 }
 0x424   :  { %276 = vsyncpa [#allocation4], 1 }

</bundles_post_ra>
